<compile_context>
chip_gen: v7x
topology: tpu7x:2x2x1
jax: 0.10.0
libtpu: 0.0.40
codegen_flags: <defaults>
</compile_context>

<pallas_src>
import jax
import jax.numpy as jnp
from jax.experimental import pallas as pl
from jax.experimental.pallas import tpu as pltpu


def _round_up(n, m):
    return (n + m - 1) // m * m


def _disc_kernel(inp_ref, w1t_ref, b1_ref, w2_ref, b2_ref, o_ref):
    # inp_ref : (in_dim, bt)  transposed input tile (features x batch-on-lanes)
    # w1t_ref : (H, in_dim)   first-layer weight, nn.Linear layout (out, in)
    # b1_ref  : (H, 1)
    # w2_ref  : (H, 1)        second-layer weight column (out_dim == 1)
    # b2_ref  : (1, 1)
    # o_ref   : (1, bt)       lane-dense score row
    h = (
        jnp.dot(w1t_ref[...], inp_ref[...], preferred_element_type=jnp.float32)
        + b1_ref[...]
    )
    # leaky_relu (PyTorch default negative_slope = 0.01)
    h = jnp.where(h > 0, h, 0.01 * h)
    # Second layer as VPU mul + sublane reduce -> (1, bt), lane-dense output.
    o_ref[...] = jnp.sum(h * w2_ref[...], axis=0, keepdims=True) + b2_ref[...]


def disc_forward(x, y, params, *, batch_tile=1024):
    """x: (B, z_dim), y: (B, x_dim) -> score: (B,)"""
    w1t, b1, w2, b2 = params
    B = x.shape[0]
    in_dim = x.shape[1] + y.shape[1]
    H = w1t.shape[0]
    assert w1t.shape == (H, in_dim)

    # Batch lives on the lane axis -> tile must be a multiple of 128.
    bt = min(batch_tile, _round_up(B, 128))
    bt = _round_up(bt, 128)
    Bp = _round_up(B, bt)
    num_tiles = Bp // bt

    # Fuse torch.cat into the wrapper; transpose so batch lands on lanes.
    inp_t = jnp.concatenate([x, y], axis=-1).astype(jnp.float32).T  # (in_dim, B)
    if Bp != B:
        inp_t = jnp.pad(inp_t, ((0, 0), (0, Bp - B)))

    flops = 2 * Bp * in_dim * H + 4 * Bp * H
    bytes_accessed = (Bp * in_dim + Bp + H * in_dim + 2 * H + 1) * 4
    cost = pl.CostEstimate(
        flops=flops, transcendentals=0, bytes_accessed=bytes_accessed
    )

    out = pl.pallas_call(
        _disc_kernel,
        out_shape=jax.ShapeDtypeStruct((1, Bp), jnp.float32),
        grid_spec=pltpu.PrefetchScalarGridSpec(
            num_scalar_prefetch=0,
            grid=(num_tiles,),
            in_specs=[
                pl.BlockSpec((in_dim, bt), lambda i: (0, i)),  # input tile
                pl.BlockSpec((H, in_dim), lambda i: (0, 0)),   # W1 (resident)
                pl.BlockSpec((H, 1), lambda i: (0, 0)),        # b1
                pl.BlockSpec((H, 1), lambda i: (0, 0)),        # W2 column
                pl.BlockSpec((1, 1), lambda i: (0, 0)),        # b2
            ],
            out_specs=pl.BlockSpec((1, bt), lambda i: (0, i)),
        ),
        compiler_params=pltpu.CompilerParams(
            dimension_semantics=("parallel",),
        ),
        cost_estimate=cost,
    )(inp_t, w1t, b1, w2, b2)

    return out[0, :B]


def init_params(key, z_dim, x_dim, hidden_dim, out_dim=1):
    """Deterministic synthetic parameters.

    w1t is stored in nn.Linear layout (out_features, in_features) = (H, in_dim);
    w2 is the output Linear weight transposed to a (H, 1) column (out_dim == 1).
    """
    assert out_dim == 1
    k1, k2, k3, k4 = jax.random.split(key, 4)
    in_dim = z_dim + x_dim
    w1t = jax.random.normal(k1, (hidden_dim, in_dim), jnp.float32) * 0.1
    b1 = jax.random.normal(k2, (hidden_dim, 1), jnp.float32) * 0.1
    w2 = jax.random.normal(k3, (hidden_dim, 1), jnp.float32) * 0.1
    b2 = jax.random.normal(k4, (1, 1), jnp.float32) * 0.1
    return (w1t, b1, w2, b2)


def reference_forward(x, y, params):
    w1t, b1, w2, b2 = params
    inp = jnp.concatenate([x, y], axis=-1)
    h = inp @ w1t.T + b1[:, 0]
    h = jnp.where(h > 0, h, 0.01 * h)
    return (h @ w2)[:, 0] + b2[0, 0]


if __name__ == "__main__":
    B, z_dim, x_dim, hidden_dim = 16, 8, 24, 32

    key = jax.random.PRNGKey(0)
    kx, ky, kp = jax.random.split(key, 3)
    x = jax.random.normal(kx, (B, z_dim), jnp.float32)
    y = jax.random.normal(ky, (B, x_dim), jnp.float32)
    params = init_params(kp, z_dim, x_dim, hidden_dim)

    score = jax.block_until_ready(disc_forward(x, y, params))
    ref = reference_forward(x, y, params)
    assert score.shape == (B,)
    assert jnp.allclose(score, ref, atol=1e-4, rtol=1e-4)

    # Exercise the multi-tile + padded-batch path (B not a tile multiple).
    B2 = 300
    kx2, ky2 = jax.random.split(jax.random.PRNGKey(1))
    x2 = jax.random.normal(kx2, (B2, z_dim), jnp.float32)
    y2 = jax.random.normal(ky2, (B2, x_dim), jnp.float32)
    score2 = jax.block_until_ready(disc_forward(x2, y2, params, batch_tile=128))
    ref2 = reference_forward(x2, y2, params)
    assert score2.shape == (B2,)
    assert jnp.allclose(score2, ref2, atol=1e-4, rtol=1e-4)

    print("KERNEL_OK")
</pallas_src>

<mosaic_0001>
module attributes {stable_mosaic.version = 11 : i64} {
  func.func @_disc_kernel(%arg0: i32, %arg1: memref<32x128xf32, #tpu.memory_space<vmem>>, %arg2: memref<32x32xf32, #tpu.memory_space<vmem>>, %arg3: memref<32x1xf32, #tpu.memory_space<vmem>>, %arg4: memref<32x1xf32, #tpu.memory_space<vmem>>, %arg5: memref<1x1xf32, #tpu.memory_space<vmem>>, %arg6: memref<1x128xf32, #tpu.memory_space<vmem>>) attributes {dimension_semantics = [#tpu.dimension_semantics<parallel>], iteration_bounds = array<i64: 1>, scalar_prefetch = 0 : i64, scratch_operands = 0 : i64, tpu.core_type = #tpu.core_type<tc>, window_params = [{transform_indices = @transform_0, window_bounds = array<i64: 32, 128>}, {pipeline_mode = #tpu.pipeline_mode<synchronous>, transform_indices = @transform_1, window_bounds = array<i64: 32, 32>}, {pipeline_mode = #tpu.pipeline_mode<synchronous>, transform_indices = @transform_2, window_bounds = array<i64: 32, 1>}, {pipeline_mode = #tpu.pipeline_mode<synchronous>, transform_indices = @transform_3, window_bounds = array<i64: 32, 1>}, {pipeline_mode = #tpu.pipeline_mode<synchronous>, transform_indices = @transform_4, window_bounds = array<i64: 1, 1>}, {transform_indices = @transform_5, window_bounds = array<i64: 1, 128>}]} {
    %c0 = arith.constant 0 : index
    %c0_0 = arith.constant 0 : index
    %0 = vector.load %arg2[%c0, %c0_0] : memref<32x32xf32, #tpu.memory_space<vmem>>, vector<32x32xf32>
    %c0_1 = arith.constant 0 : index
    %c0_2 = arith.constant 0 : index
    %1 = vector.load %arg1[%c0_1, %c0_2] : memref<32x128xf32, #tpu.memory_space<vmem>>, vector<32x128xf32>
    %cst = arith.constant dense<0.000000e+00> : vector<32x128xf32>
    %2 = tpu.matmul %0, %1, %cst {dimension_numbers = #tpu.dot_dimension_numbers<[1], [0], [0], [1], [0, 0, 1, 1], [], []>} : vector<32x32xf32>, vector<32x128xf32>, vector<32x128xf32> -> vector<32x128xf32>
    %c0_3 = arith.constant 0 : index
    %c0_4 = arith.constant 0 : index
    %3 = vector.load %arg3[%c0_3, %c0_4] : memref<32x1xf32, #tpu.memory_space<vmem>>, vector<32x1xf32>
    %4 = vector.broadcast %3 : vector<32x1xf32> to vector<32x128xf32>
    %5 = arith.addf %2, %4 : vector<32x128xf32>
    %cst_5 = arith.constant 0.000000e+00 : f32
    %6 = vector.broadcast %cst_5 : f32 to vector<32x128xf32>
    %7 = arith.cmpf ogt, %5, %6 : vector<32x128xf32>
    %cst_6 = arith.constant 0.00999999977 : f32
    %8 = vector.broadcast %cst_6 : f32 to vector<32x128xf32>
    %9 = arith.mulf %8, %5 : vector<32x128xf32>
    %10 = arith.select %7, %5, %9 : vector<32x128xi1>, vector<32x128xf32>
    %c0_7 = arith.constant 0 : index
    %c0_8 = arith.constant 0 : index
    %11 = vector.load %arg4[%c0_7, %c0_8] : memref<32x1xf32, #tpu.memory_space<vmem>>, vector<32x1xf32>
    %12 = vector.broadcast %11 : vector<32x1xf32> to vector<32x128xf32>
    %13 = arith.mulf %10, %12 : vector<32x128xf32>
    %cst_9 = arith.constant dense<0.000000e+00> : vector<128xf32>
    %14 = vector.multi_reduction <add>, %13, %cst_9 [0] : vector<32x128xf32> to vector<128xf32>
    %15 = vector.shape_cast %14 : vector<128xf32> to vector<1x128xf32>
    %c0_10 = arith.constant 0 : index
    %c0_11 = arith.constant 0 : index
    %16 = vector.load %arg5[%c0_10, %c0_11] : memref<1x1xf32, #tpu.memory_space<vmem>>, vector<1x1xf32>
    %17 = vector.broadcast %16 : vector<1x1xf32> to vector<1x128xf32>
    %18 = arith.addf %15, %17 : vector<1x128xf32>
    %c0_12 = arith.constant 0 : index
    %c0_13 = arith.constant 0 : index
    %19 = vector.load %arg6[%c0_12, %c0_13] : memref<1x128xf32, #tpu.memory_space<vmem>>, vector<1x128xf32>
    tpu.vector_store %arg6[%c0_12, %c0_13], %18 {strides = array<i32>} : memref<1x128xf32, #tpu.memory_space<vmem>>, vector<1x128xf32>,
    return
  }
  func.func @transform_0(%arg0: i32) -> (i32, i32) {
    %c0_i32 = arith.constant 0 : i32
    %c0_i32_0 = arith.constant 0 : i32
    return %c0_i32, %arg0 : i32, i32
  }
  func.func @transform_1(%arg0: i32) -> (i32, i32) {
    %c0_i32 = arith.constant 0 : i32
    %c0_i32_0 = arith.constant 0 : i32
    %c0_i32_1 = arith.constant 0 : i32
    return %c0_i32, %c0_i32_0 : i32, i32
  }
  func.func @transform_2(%arg0: i32) -> (i32, i32) {
    %c0_i32 = arith.constant 0 : i32
    %c0_i32_0 = arith.constant 0 : i32
    %c0_i32_1 = arith.constant 0 : i32
    return %c0_i32, %c0_i32_0 : i32, i32
  }
  func.func @transform_3(%arg0: i32) -> (i32, i32) {
    %c0_i32 = arith.constant 0 : i32
    %c0_i32_0 = arith.constant 0 : i32
    %c0_i32_1 = arith.constant 0 : i32
    return %c0_i32, %c0_i32_0 : i32, i32
  }
  func.func @transform_4(%arg0: i32) -> (i32, i32) {
    %c0_i32 = arith.constant 0 : i32
    %c0_i32_0 = arith.constant 0 : i32
    %c0_i32_1 = arith.constant 0 : i32
    return %c0_i32, %c0_i32_0 : i32, i32
  }
  func.func @transform_5(%arg0: i32) -> (i32, i32) {
    %c0_i32 = arith.constant 0 : i32
    %c0_i32_0 = arith.constant 0 : i32
    return %c0_i32, %arg0 : i32, i32
  }
}

</mosaic_0001>

<bundles_post_ra>
// kernel: tpu_custom_call.1
= control target key start
LH: loop header
LB: loop body
LE: loop exit
PB: predicated region body
PF: predicated region fallthrough
CT: control target
= control target key end

     0   :  { %s393_s0 = inlined_call_operand.vmem [shape: f32[32,128], index: 0, kind: input, shape index: {}]   ;;  %s394_s1 = inlined_call_operand.vmem [shape: f32[32,32], index: 1, kind: input, shape index: {}]   ;;  %s395_s2 = inlined_call_operand.vmem [shape: f32[32,1], index: 2, kind: input, shape index: {}]   ;;  %s396_s3 = inlined_call_operand.vmem [shape: f32[32,1], index: 3, kind: input, shape index: {}]   ;;  %s397_s4 = inlined_call_operand.<no memory space> [shape: f32[1,1], index: 4, kind: input, shape index: {}]   ;;  %s398_s5 = inlined_call_operand.hbm [shape: f32[1,128], index: 5, kind: output, shape index: {}]  }
   0x1   :  { %v10_v0 = vstv %s397_s4 }
   0x2   :  { %11 = vst [vmem:[#allocation2] sm:$0x1] %v10_v0 }
   0x3   :  { %v27_v1 = vld [vmem:[%s393_s0] sm:$0xff]  ;;  %v28_v2 = vld [vmem:[%s393_s0 + $0x8] sm:$0xff]  ;;  %v29_v3 = vld [vmem:[%s393_s0 + $0x10] sm:$0xff]  ;;  %vm55_vm0 = vcmask 261120   ;;  %v294_v8 = vmov 0  }
   0x4   :  { %v254_v4 = vpack.c.bf16 %v28_v2, %v27_v1  ;;  %v30_v5 = vld [vmem:[%s393_s0 + $0x18] sm:$0xff]  ;;  %v23_v6 = vld [vmem:[%s394_s1] sm:$0xff]  ;;  %v25_v7 = vld [vmem:[%s394_s1 + $0x10] sm:$0xff]  ;;  %268 = vset.pattern.permute.xlu0 %v294_v8  ;;  %269 = vset.pattern.permute.xlu1 %v294_v8 }
   0x5   :  { %v258_v9 = vpack.c.bf16 %v30_v5, %v29_v3  ;;  %248 = vmatprep.mubr.msk.f32.mxu0 %vm55_vm0, %v23_v6  ;;  %251 = vmatprep.mubr.msk.f32.mxu1 %vm55_vm0, %v25_v7  ;;  %v31_v10 = vld [vmem:[%s395_s2] sm:$0xff]  ;;  %v33_v11 = vld [vmem:[%s395_s2 + $0x10] sm:$0xff] }
   0x6   :  { %255 = vmatprep.subr.bf16.mxu0 %v254_v4  ;;  %262 = vmatprep.subr.bf16.mxu1 %v254_v4 }
   0x7   :  { %257 = vmatpush3.bf16.msra.mxu0 %v254_v4  ;;  %264 = vmatpush3.bf16.msra.mxu1 %v254_v4 }
   0x8   :  { %259 = vmatprep.subr.bf16.mxu0 %v258_v9  ;;  %263 = vmatprep.subr.bf16.mxu1 %v258_v9 }
   0x9   :  { %12 = vsyncpa [#allocation4], 0  ;;  %37 = vperm.xlu0 %268, %v31_v10   ;;  %47 = vperm.xlu1 %269, %v33_v11   ;;  %v32_v12 = vld [vmem:[%s395_s2 + $0x8] sm:$0xff]  ;;  %v34_v13 = vld [vmem:[%s395_s2 + $0x18] sm:$0xff]  ;;  %v208_v51 = vlaneseq }
   0xa   :  { %v24_v14 = vld [vmem:[%s394_s1 + $0x8] sm:$0xff]  ;;  %v26_v15 = vld [vmem:[%s394_s1 + $0x18] sm:$0xff]  ;;  %v165_v16 = vld [vmem:[%s396_s3] sm:$0xff] }
   0xb   :  { %261 = vmatpush3.bf16.msra.mxu0 %v258_v9  ;;  %265 = vmatpush3.bf16.msra.mxu1 %v258_v9  ;;  %v166_v17 = vld [vmem:[%s396_s3 + $0x8] sm:$0xff]  ;;  %v167_v18 = vld [vmem:[%s396_s3 + $0x10] sm:$0xff]  ;;  %v168_v19 = vld [vmem:[%s396_s3 + $0x18] sm:$0xff]  ;;  %v209_v54 = vshrl.u32 %v208_v51, 7  ;;  %s295_s3 = smov [#allocation3]  }
   0xc   :  { %v202_v20 = vld [vmem:[#allocation2] sm:$0x1]  ;;  %s220_s23 = sshll.u32 %s295_s3, 4  ;;  %s221_s23 = int_to_ptr.vmem [resolvable:$true] %s220_s23 }
   0xd   :  { %42 = vperm.xlu0 %268, %v32_v12   ;;  %52 = vperm.xlu1 %269, %v34_v13   ;;  %v210_v57 = vsub.s32 0, %v209_v54  ;;  %s270_s24 = scalar_lea.vmem %s221_s23, 16  ;;  %s274_s25 = scalar_lea.vmem %s221_s23, 32 }
   0xe   :  { %249 = vmatmul.mubr.msk.f32.vlgmr.msra.gmra.mrb[0].mxu0 %vm55_vm0, %v24_v14  ;;  %252 = vmatmul.mubr.msk.f32.vlgmr.msra.gmra.mrb[0].mxu1 %vm55_vm0, %v26_v15  ;;  %p271_p0 = scmp.ne.s32.totalorder %s221_s23, %s270_s24  ;;  %p275_p1 = scmp.lt.s32.totalorder %s221_s23, %s221_s23 }
   0xf   :  { %p276_p2 = scmp.lt.s32.totalorder %s274_s25, %s270_s24 }
  0x11   :  { %171 = vperm.xlu0 %268, %v165_v16   ;;  %176 = vperm.xlu1 %269, %v166_v17   ;;  %p277_p3 = por %p276_p2, %p275_p1 }
  0x13   :  { %p278_p4 = pnand %p277_p3, %p271_p0 }
  0x15   :  { %181 = vperm.xlu0 %268, %v167_v18   ;;  %186 = vperm.xlu1 %269, %v168_v19  }
  0x19   :  { %205 = vperm.xlu0 %268, %v202_v20  }
  0x88   :  { %v38_v21 = vpop.permute.xlu0 %37  ;;  %v48_v22 = vpop.permute.xlu1 %47 }
  0x8c   :  { %v43_v23 = vpop.permute.xlu0 %42  ;;  %v53_v24 = vpop.permute.xlu1 %52 }
  0x90   :  { %v172_v31 = vpop.permute.xlu0 %171  ;;  %v177_v36 = vpop.permute.xlu1 %176 }
  0x94   :  { %v182_v44 = vpop.permute.xlu0 %181  ;;  %v187_v48 = vpop.permute.xlu1 %186 }
  0x98   :  { %v206_v59 = vpop.permute.xlu0 %205 }
  0x99   :  { %v211_v61 = vrot.slane %v206_v59, %v210_v57 }
  0xe1   :  { %v250_v25 = vpop.f32.mrb[0].mxu0  ;;  %v253_v26 = vpop.f32.mrb[0].mxu1 }
  0xe2   :  { %v140_v27 = vadd.f32 %v250_v25, %v43_v23  ;;  %v150_v28 = vadd.f32 %v253_v26, %v53_v24  ;;  %v134_v29 = vpop.f32.mrb[1].mxu0  ;;  %v144_v30 = vpop.f32.mrb[1].mxu1 }
  0xe3   :  { %v135_v32 = vadd.f32 %v134_v29, %v38_v21  ;;  %v145_v33 = vadd.f32 %v144_v30, %v48_v22 }
  0xe4   :  { %vm154_vm1 = vcmp.gt.f32.partialorder %v140_v27, 0.0  ;;  %v158_v34 = vmul.f32 0.01, %v140_v27  ;;  %v160_v35 = vmul.f32 0.01, %v150_v28  ;;  %vm156_vm4 = vcmp.gt.f32.partialorder %v150_v28, 0.0 }
  0xe5   :  { %vm153_vm2 = vcmp.gt.f32.partialorder %v135_v32, 0.0  ;;  %v157_v37 = vmul.f32 0.01, %v135_v32  ;;  %vm155_vm3 = vcmp.gt.f32.partialorder %v145_v33, 0.0  ;;  %v159_v38 = vmul.f32 0.01, %v145_v33 }
  0xe6   :  { %v162_v39 = vsel %vm154_vm1, %v140_v27, %v158_v34  ;;  %v164_v45 = vsel %vm156_vm4, %v150_v28, %v160_v35 }
  0xe7   :  { %v190_v40 = vmul.f32 %v177_v36, %v162_v39  ;;  %v161_v41 = vsel %vm153_vm2, %v135_v32, %v157_v37  ;;  %v163_v42 = vsel %vm155_vm3, %v145_v33, %v159_v38  ;;  %v192_v49 = vmul.f32 %v187_v48, %v164_v45 }
  0xe8   :  { %v189_v43 = vmul.f32 %v172_v31, %v161_v41  ;;  %v191_v47 = vmul.f32 %v182_v44, %v163_v42 }
  0xea   :  { %v193_v46 = vadd.f32 %v190_v40, %v189_v43 }
  0xec   :  { %v194_v50 = vadd.f32 %v193_v46, %v191_v47 }
  0xee   :  { %v195_v52 = vadd.f32 %v194_v50, %v192_v49 }
  0xf0   :  { %v196_v53 = vrot.slane %v195_v52, 4 }
  0xf2   :  { %v197_v55 = vadd.f32 %v196_v53, %v195_v52 }
  0xf4   :  { %v198_v56 = vrot.slane %v197_v55, 2 }
  0xf6   :  { %v199_v58 = vadd.f32 %v198_v56, %v197_v55 }
  0xf8   :  { %v200_v60 = vrot.slane %v199_v58, 1 }
  0xfa   :  { %v201_v62 = vadd.f32 %v200_v60, %v199_v58 }
  0xfc   :  { %v212_v63 = vadd.f32 %v211_v61, %v201_v62 }
  0xfe   :  { %213 = vst [vmem:[#allocation3] sm:$0x1] %v212_v63 }
  0xff   :  { %281 = shalt.err (!%p278_p4)
}
 0x100   :  { %s282_s4 = scalar_lea.hbm %s398_s5, 16 }
 0x101   :  { %p283_p5 = scmp.ne.s32.totalorder %s398_s5, %s282_s4  ;;  %p286_p6 = scmp.lt.u32.totalorder %s282_s4, %s398_s5 }
 0x103   :  { %p288_p7 = pnand %p286_p6, %p283_p5 }
 0x105   :  { %291 = shalt.err (!%p288_p7)
}
 0x106   :  { %223 = dma.vmem_to_hbm [thread:$0]  %s221_s23, 16, %s398_s5, [#allocation4]  }
 0x107   :  { %292 = dma.done.wait [#allocation4], 16  }
 0x108   :  { %293 = vsyncadd [#allocation4], 4294967280 }
 0x109   :  { %227 = vsyncpa [#allocation4], 1 }

</bundles_post_ra>
